<compile_context>
chip_gen: v7x
topology: tpu7x:2x2x1
jax: 0.10.0
libtpu: 0.0.40
codegen_flags: <defaults>
</compile_context>

<pallas_src>
import functools

import jax
import jax.numpy as jnp
from jax import lax
from jax.experimental import pallas as pl
from jax.experimental.pallas import tpu as pltpu

NEG_INF = float("-inf")
LANES = 128


def _round_up(x, m):
    return ((x + m - 1) // m) * m


def _router_kernel(x_ref, w1_ref, b1_ref, w2_ref, b2_ref,
                   probs_ref, idx_ref, *, active_experts, hidden_chunk):
    tm = x_ref.shape[0]                 # tokens in this tile
    hidden = w1_ref.shape[1]            # 4E
    ne_pad = w2_ref.shape[1]            # experts lane-padded to 128
    ne8 = probs_ref.shape[0]            # experts padded to a multiple of 8
    k_pad = idx_ref.shape[0]            # active_experts padded to a multiple of 8

    x = x_ref[...]                                                     # (TM, E)

    # ---- router MLP (MXU), hidden dim in chunks so the (TM, 4E) activation ----
    # ---- is never materialized whole (bounds VMEM; exact: ReLU is elementwise) ----
    num_chunks = hidden // hidden_chunk
    score = jnp.zeros((tm, ne_pad), jnp.float32)
    for c in range(num_chunks):                    # static, small trip count
        off = c * hidden_chunk
        h = jnp.dot(x, w1_ref[:, pl.ds(off, hidden_chunk)],
                    preferred_element_type=jnp.float32)
        h = jnp.maximum(h + b1_ref[:, pl.ds(off, hidden_chunk)], 0.0)  # ReLU, f32
        h = h.astype(w2_ref.dtype)                 # second matmul stays f32
        score = score + jnp.dot(h, w2_ref[pl.ds(off, hidden_chunk), :],
                                preferred_element_type=jnp.float32)
    score = score + b2_ref[...]        # padded expert lanes have -inf bias -> -inf

    # ---- one tile-aligned transpose puts tokens on lanes; everything below ----
    # ---- works on tiny (ne8, TM) arrays (cheap sublane reductions).        ----
    score_t = score.T[:ne8, :]                                         # (NE8, TM)

    sub_iota = lax.broadcasted_iota(jnp.int32, (ne8, tm), 0)           # expert id rows
    work = score_t
    sels = []
    exps = []
    m0 = None
    for r in range(active_experts):                # k is small & static
        cur_max = jnp.max(work, axis=0, keepdims=True)                 # (1, TM)
        hit = work == cur_max
        # first-occurrence argmax: smallest expert id among maxima (matches lax.top_k)
        idx_r = jnp.min(jnp.where(hit, sub_iota, ne8), axis=0, keepdims=True)
        sel = sub_iota == idx_r                                        # one-hot (NE8, TM)
        sels.append((sel, idx_r))
        if r == 0:
            m0 = cur_max                           # largest selected score
        exps.append(jnp.exp(cur_max - m0))         # (1, TM); r==0 -> exp(0)=1
        if r + 1 < active_experts:
            work = jnp.where(sel, NEG_INF, work)   # exclude for next round

    # ---- softmax over the k selected scores only (== masked softmax) ----
    denom = exps[0]
    for e in exps[1:]:
        denom = denom + e
    inv = pl.reciprocal(denom, approx=False)       # exact: keeps 1e-5 match vs ref

    probs = jnp.zeros((ne8, tm), jnp.float32)      # non-selected / padded experts -> 0
    idx_out = jnp.zeros((k_pad, tm), jnp.int32)
    kp_iota = lax.broadcasted_iota(jnp.int32, (k_pad, tm), 0)
    for r in range(active_experts):
        sel, idx_r = sels[r]
        probs = jnp.where(sel, exps[r] * inv, probs)
        idx_out = jnp.where(kp_iota == r, idx_r, idx_out)   # row r <- rank-r index

    probs_ref[...] = probs.astype(probs_ref.dtype)          # (NE8, TM) lane-dense
    idx_ref[...] = idx_out                                  # (K8, TM) lane-dense


def topk_router_forward(x, w1, b1, w2, b2, *, active_experts,
                        token_tile=512, hidden_chunk=512, use_bf16_matmul=False):
    """x: (batch, seq, embed) float32.  Returns (router_output, indices)."""
    batch, seq, embed = x.shape
    hidden = w1.shape[1]
    num_experts = w2.shape[1]
    assert active_experts <= num_experts, "active_experts must be <= num_experts"
    n_tokens = batch * seq

    ne_pad = _round_up(max(num_experts, LANES), LANES)   # lane-padded score width
    ne8 = _round_up(num_experts, 8)                      # sublane-padded probs rows
    k_pad = _round_up(active_experts, 8)                 # sublane-padded idx rows

    # Token tile = lane dim of the outputs -> multiple of 128.  Don't over-pad
    # tiny inputs; split into >=2 grid steps when possible (v7x has 2 TCs).
    tile = min(token_tile, _round_up(n_tokens, LANES))
    if _round_up(n_tokens, LANES) >= 2 * LANES and n_tokens <= tile:
        tile = _round_up((n_tokens + 1) // 2, LANES)
    n_pad = _round_up(n_tokens, tile)

    # Hidden-chunk size (keeps the (tile, chunk) activation bounded on v7x).
    hc = min(hidden_chunk, hidden)
    if hidden % hc != 0 or hc % LANES != 0:
        hc = hidden                                     # fall back to one chunk

    x_flat = x.reshape(n_tokens, embed)
    if n_pad != n_tokens:
        x_flat = jnp.pad(x_flat, ((0, n_pad - n_tokens), (0, 0)))

    # Padded expert columns: zero weights, -inf bias -> score exactly -inf.
    w2_p = jnp.pad(w2, ((0, 0), (0, ne_pad - num_experts))).astype(jnp.float32)
    b2_p = jnp.pad(b2, ((0, ne_pad - num_experts),), constant_values=NEG_INF)

    # Optional bf16 for the FIRST matmul only (x, w1); score matmul stays f32 so
    # top-k tie-break semantics match the f32 torch reference as closely as possible.
    in_dtype = jnp.bfloat16 if use_bf16_matmul else x.dtype
    x_flat = x_flat.astype(in_dtype)
    w1_c = w1.astype(in_dtype)
    b1_2d = b1.reshape(1, hidden).astype(jnp.float32)
    b2_2d = b2_p.reshape(1, ne_pad).astype(jnp.float32)

    grid = (n_pad // tile,)
    kernel = functools.partial(_router_kernel, active_experts=active_experts,
                               hidden_chunk=hc)

    in_itemsize = jnp.dtype(in_dtype).itemsize
    flops = 2 * n_pad * (embed * hidden + hidden * ne_pad)
    bytes_accessed = (n_pad * embed * in_itemsize          # x
                      + embed * hidden * in_itemsize       # w1
                      + hidden * ne_pad * 4                # w2
                      + (hidden + ne_pad) * 4              # biases
                      + (ne8 + k_pad) * n_pad * 4)         # packed probs + idx
    cost = pl.CostEstimate(flops=flops, transcendentals=n_pad * active_experts,
                           bytes_accessed=int(bytes_accessed))

    # Explicit VMEM budget: double-buffered blocks + live intermediates + headroom.
    vmem_bytes = (2 * tile * embed * in_itemsize           # x blocks
                  + 2 * embed * hidden * in_itemsize       # w1 (constant index_map)
                  + 2 * hidden * ne_pad * 4                # w2
                  + 2 * (hidden + ne_pad) * 4              # biases
                  + 2 * (ne8 + k_pad) * tile * 4           # outputs
                  + 2 * tile * ne_pad * 4                  # score + transposed score
                  + tile * hc * 4                          # live hidden chunk
                  + (2 << 20))
    vmem_limit = int(min(max(vmem_bytes, 32 << 20), 64 << 20))

    probs_p, idx_p = pl.pallas_call(
        kernel,
        out_shape=(
            jax.ShapeDtypeStruct((ne8, n_pad), jnp.float32),
            jax.ShapeDtypeStruct((k_pad, n_pad), jnp.int32),
        ),
        grid_spec=pltpu.PrefetchScalarGridSpec(
            num_scalar_prefetch=0,
            grid=grid,
            in_specs=[
                pl.BlockSpec((tile, embed), lambda i: (i, 0)),
                # Weights/biases: full-array blocks with constant index_map
                # -> DMA'd once, VMEM-resident across the token grid.
                pl.BlockSpec((embed, hidden), lambda i: (0, 0)),
                pl.BlockSpec((1, hidden), lambda i: (0, 0)),
                pl.BlockSpec((hidden, ne_pad), lambda i: (0, 0)),
                pl.BlockSpec((1, ne_pad), lambda i: (0, 0)),
            ],
            out_specs=[
                pl.BlockSpec((ne8, tile), lambda i: (0, i)),     # probs: tokens on lanes
                pl.BlockSpec((k_pad, tile), lambda i: (0, i)),   # idx:   tokens on lanes
            ],
        ),
        compiler_params=pltpu.CompilerParams(
            dimension_semantics=("parallel",),
            vmem_limit_bytes=vmem_limit),
        cost_estimate=cost,
    )(x_flat, w1_c, b1_2d, w2_p, b2_2d)

    # Tiny post-processing passes (outputs are ~num_experts/128 the old size).
    probs = probs_p[:num_experts, :n_tokens].T.reshape(batch, seq, num_experts)
    idx = idx_p[:active_experts, :n_tokens].T.reshape(batch, seq, active_experts)
    return probs, idx


def _reference(x, w1, b1, w2, b2, active_experts):
    """Pure-JAX reference matching the torch TopkRouter semantics."""
    h = jnp.maximum(x @ w1 + b1, 0.0)
    score = h @ w2 + b2
    _, idx = lax.top_k(score, active_experts)
    one_hot = jnp.any(jax.nn.one_hot(idx, score.shape[-1], dtype=bool), axis=-2)
    masked = jnp.where(one_hot, score, NEG_INF)
    return jax.nn.softmax(masked, axis=-1), idx


# TODO(synk): SparseMoE's per-expert boolean-mask gather/scatter dispatch (and the
# surrounding attention/embedding layers) are data-dependent token routing left to
# plain XLA; only the router (the MoE-specific hot path) is kernelized here.

if __name__ == "__main__":
    # Small, deterministic config: batch=2, seq=8, embed=32, 8 experts, top-2.
    batch, seq, embed = 2, 8, 32
    num_experts, active_experts = 8, 2
    hidden = embed * 4

    key = jax.random.PRNGKey(0)
    k_x, k_w1, k_b1, k_w2, k_b2 = jax.random.split(key, 5)

    x = jax.random.normal(k_x, (batch, seq, embed), dtype=jnp.float32)
    # Deterministic synthetic parameters (shapes from nn.Linear layers).
    w1 = 0.05 * jax.random.normal(k_w1, (embed, hidden), dtype=jnp.float32)
    b1 = 0.05 * jax.random.normal(k_b1, (hidden,), dtype=jnp.float32)
    w2 = 0.05 * jax.random.normal(k_w2, (hidden, num_experts), dtype=jnp.float32)
    b2 = 0.05 * jax.random.normal(k_b2, (num_experts,), dtype=jnp.float32)

    probs, idx = topk_router_forward(
        x, w1, b1, w2, b2, active_experts=active_experts)
    jax.block_until_ready((probs, idx))

    # Sanity-check against a pure-JAX reference.
    ref_probs, ref_idx = _reference(x, w1, b1, w2, b2, active_experts)
    assert probs.shape == (batch, seq, num_experts)
    assert idx.shape == (batch, seq, active_experts)
    assert jnp.allclose(probs, ref_probs, atol=1e-5), "router_output mismatch"
    # Index sets must match (ordering within top-k is by descending score in both).
    assert jnp.array_equal(jnp.sort(idx, axis=-1),
                           jnp.sort(ref_idx.astype(jnp.int32), axis=-1)), "indices mismatch"

    print("KERNEL_OK")
</pallas_src>

<mosaic_0001>
module attributes {stable_mosaic.version = 11 : i64} {
  func.func @_router_kernel(%arg0: i32, %arg1: memref<128x32xf32, #tpu.memory_space<vmem>>, %arg2: memref<32x128xf32, #tpu.memory_space<vmem>>, %arg3: memref<1x128xf32, #tpu.memory_space<vmem>>, %arg4: memref<128x128xf32, #tpu.memory_space<vmem>>, %arg5: memref<1x128xf32, #tpu.memory_space<vmem>>, %arg6: memref<8x128xf32, #tpu.memory_space<vmem>>, %arg7: memref<8x128xi32, #tpu.memory_space<vmem>>) attributes {dimension_semantics = [#tpu.dimension_semantics<parallel>], iteration_bounds = array<i64: 1>, scalar_prefetch = 0 : i64, scratch_operands = 0 : i64, tpu.core_type = #tpu.core_type<tc>, window_params = [{transform_indices = @transform_0, window_bounds = array<i64: 128, 32>}, {pipeline_mode = #tpu.pipeline_mode<synchronous>, transform_indices = @transform_1, window_bounds = array<i64: 32, 128>}, {pipeline_mode = #tpu.pipeline_mode<synchronous>, transform_indices = @transform_2, window_bounds = array<i64: 1, 128>}, {pipeline_mode = #tpu.pipeline_mode<synchronous>, transform_indices = @transform_3, window_bounds = array<i64: 128, 128>}, {pipeline_mode = #tpu.pipeline_mode<synchronous>, transform_indices = @transform_4, window_bounds = array<i64: 1, 128>}, {transform_indices = @transform_5, window_bounds = array<i64: 8, 128>}, {transform_indices = @transform_6, window_bounds = array<i64: 8, 128>}]} {
    %c0 = arith.constant 0 : index
    %c0_0 = arith.constant 0 : index
    %0 = vector.load %arg1[%c0, %c0_0] : memref<128x32xf32, #tpu.memory_space<vmem>>, vector<128x32xf32>
    %cst = arith.constant 0.000000e+00 : f32
    %1 = vector.broadcast %cst : f32 to vector<128x128xf32>
    %c0_1 = arith.constant 0 : index
    %c0_2 = arith.constant 0 : index
    %2 = vector.load %arg2[%c0_1, %c0_2] : memref<32x128xf32, #tpu.memory_space<vmem>>, vector<32x128xf32>
    %cst_3 = arith.constant dense<0.000000e+00> : vector<128x128xf32>
    %3 = tpu.matmul %0, %2, %cst_3 {dimension_numbers = #tpu.dot_dimension_numbers<[1], [0], [0], [1], [0, 0, 1, 1], [], []>} : vector<128x32xf32>, vector<32x128xf32>, vector<128x128xf32> -> vector<128x128xf32>
    %c0_4 = arith.constant 0 : index
    %c0_5 = arith.constant 0 : index
    %4 = vector.load %arg3[%c0_4, %c0_5] : memref<1x128xf32, #tpu.memory_space<vmem>>, vector<1x128xf32>
    %5 = vector.broadcast %4 : vector<1x128xf32> to vector<128x128xf32>
    %6 = arith.addf %3, %5 : vector<128x128xf32>
    %cst_6 = arith.constant 0.000000e+00 : f32
    %7 = vector.broadcast %cst_6 : f32 to vector<128x128xf32>
    %8 = arith.maximumf %6, %7 : vector<128x128xf32>
    %c0_7 = arith.constant 0 : index
    %c0_8 = arith.constant 0 : index
    %9 = vector.load %arg4[%c0_7, %c0_8] : memref<128x128xf32, #tpu.memory_space<vmem>>, vector<128x128xf32>
    %cst_9 = arith.constant dense<0.000000e+00> : vector<128x128xf32>
    %10 = tpu.matmul %8, %9, %cst_9 {dimension_numbers = #tpu.dot_dimension_numbers<[1], [0], [0], [1], [0, 0, 1, 1], [], []>} : vector<128x128xf32>, vector<128x128xf32>, vector<128x128xf32> -> vector<128x128xf32>
    %11 = arith.addf %1, %10 : vector<128x128xf32>
    %c0_10 = arith.constant 0 : index
    %c0_11 = arith.constant 0 : index
    %12 = vector.load %arg5[%c0_10, %c0_11] : memref<1x128xf32, #tpu.memory_space<vmem>>, vector<1x128xf32>
    %13 = vector.broadcast %12 : vector<1x128xf32> to vector<128x128xf32>
    %14 = arith.addf %11, %13 : vector<128x128xf32>
    %15 = tpu.transpose %14, [1, 0] : vector<128x128xf32> -> vector<128x128xf32>
    %16 = vector.extract_strided_slice %15 {offsets = [0, 0], sizes = [8, 128], strides = [1, 1]} : vector<128x128xf32> to vector<8x128xf32>
    %17 = tpu.iota {dimensions = array<i32: 0>} : vector<8x128xi32>
    %cst_12 = arith.constant dense<0xFF800000> : vector<128xf32>
    %18 = vector.multi_reduction <maximumf>, %16, %cst_12 [0] : vector<8x128xf32> to vector<128xf32>
    %19 = vector.shape_cast %18 : vector<128xf32> to vector<1x128xf32>
    %20 = vector.broadcast %19 : vector<1x128xf32> to vector<8x128xf32>
    %21 = arith.cmpf oeq, %16, %20 : vector<8x128xf32>
    %c8_i32 = arith.constant 8 : i32
    %22 = vector.broadcast %c8_i32 : i32 to vector<8x128xi32>
    %23 = arith.select %21, %17, %22 : vector<8x128xi1>, vector<8x128xi32>
    %cst_13 = arith.constant dense<2147483647> : vector<128xi32>
    %24 = vector.multi_reduction <minsi>, %23, %cst_13 [0] : vector<8x128xi32> to vector<128xi32>
    %25 = vector.shape_cast %24 : vector<128xi32> to vector<1x128xi32>
    %26 = vector.broadcast %25 : vector<1x128xi32> to vector<8x128xi32>
    %27 = arith.cmpi eq, %17, %26 : vector<8x128xi32>
    %28 = arith.subf %19, %19 : vector<1x128xf32>
    %29 = math.exp %28 : vector<1x128xf32>
    %cst_14 = arith.constant 0xFF800000 : f32
    %30 = vector.broadcast %cst_14 : f32 to vector<8x128xf32>
    %31 = arith.select %27, %30, %16 : vector<8x128xi1>, vector<8x128xf32>
    %cst_15 = arith.constant dense<0xFF800000> : vector<128xf32>
    %32 = vector.multi_reduction <maximumf>, %31, %cst_15 [0] : vector<8x128xf32> to vector<128xf32>
    %33 = vector.shape_cast %32 : vector<128xf32> to vector<1x128xf32>
    %34 = vector.broadcast %33 : vector<1x128xf32> to vector<8x128xf32>
    %35 = arith.cmpf oeq, %31, %34 : vector<8x128xf32>
    %c8_i32_16 = arith.constant 8 : i32
    %36 = vector.broadcast %c8_i32_16 : i32 to vector<8x128xi32>
    %37 = arith.select %35, %17, %36 : vector<8x128xi1>, vector<8x128xi32>
    %cst_17 = arith.constant dense<2147483647> : vector<128xi32>
    %38 = vector.multi_reduction <minsi>, %37, %cst_17 [0] : vector<8x128xi32> to vector<128xi32>
    %39 = vector.shape_cast %38 : vector<128xi32> to vector<1x128xi32>
    %40 = vector.broadcast %39 : vector<1x128xi32> to vector<8x128xi32>
    %41 = arith.cmpi eq, %17, %40 : vector<8x128xi32>
    %42 = arith.subf %33, %19 : vector<1x128xf32>
    %43 = math.exp %42 : vector<1x128xf32>
    %44 = arith.addf %29, %43 : vector<1x128xf32>
    %45 = tpu.reciprocal %44 : vector<1x128xf32> -> vector<1x128xf32>
    %cst_18 = arith.constant 0.000000e+00 : f32
    %46 = vector.broadcast %cst_18 : f32 to vector<8x128xf32>
    %c0_i32 = arith.constant 0 : i32
    %47 = vector.broadcast %c0_i32 : i32 to vector<8x128xi32>
    %48 = tpu.iota {dimensions = array<i32: 0>} : vector<8x128xi32>
    %49 = arith.mulf %29, %45 : vector<1x128xf32>
    %50 = vector.shape_cast %49 : vector<1x128xf32> to vector<1x128xf32>
    %51 = vector.broadcast %50 : vector<1x128xf32> to vector<8x128xf32>
    %52 = arith.select %27, %51, %46 : vector<8x128xi1>, vector<8x128xf32>
    %c0_i32_19 = arith.constant 0 : i32
    %53 = vector.broadcast %c0_i32_19 : i32 to vector<8x128xi32>
    %54 = arith.cmpi eq, %48, %53 : vector<8x128xi32>
    %55 = vector.shape_cast %25 : vector<1x128xi32> to vector<1x128xi32>
    %56 = vector.broadcast %55 : vector<1x128xi32> to vector<8x128xi32>
    %57 = arith.select %54, %56, %47 : vector<8x128xi1>, vector<8x128xi32>
    %58 = arith.mulf %43, %45 : vector<1x128xf32>
    %59 = vector.shape_cast %58 : vector<1x128xf32> to vector<1x128xf32>
    %60 = vector.broadcast %59 : vector<1x128xf32> to vector<8x128xf32>
    %61 = arith.select %41, %60, %52 : vector<8x128xi1>, vector<8x128xf32>
    %c1_i32 = arith.constant 1 : i32
    %62 = vector.broadcast %c1_i32 : i32 to vector<8x128xi32>
    %63 = arith.cmpi eq, %48, %62 : vector<8x128xi32>
    %64 = vector.shape_cast %39 : vector<1x128xi32> to vector<1x128xi32>
    %65 = vector.broadcast %64 : vector<1x128xi32> to vector<8x128xi32>
    %66 = arith.select %63, %65, %57 : vector<8x128xi1>, vector<8x128xi32>
    %c0_20 = arith.constant 0 : index
    %c0_21 = arith.constant 0 : index
    %67 = vector.load %arg6[%c0_20, %c0_21] : memref<8x128xf32, #tpu.memory_space<vmem>>, vector<8x128xf32>
    tpu.vector_store %arg6[%c0_20, %c0_21], %61 {strides = array<i32>} : memref<8x128xf32, #tpu.memory_space<vmem>>, vector<8x128xf32>,
    %c0_22 = arith.constant 0 : index
    %c0_23 = arith.constant 0 : index
    %68 = vector.load %arg7[%c0_22, %c0_23] : memref<8x128xi32, #tpu.memory_space<vmem>>, vector<8x128xi32>
    tpu.vector_store %arg7[%c0_22, %c0_23], %66 {strides = array<i32>} : memref<8x128xi32, #tpu.memory_space<vmem>>, vector<8x128xi32>,
    return
  }
  func.func @transform_0(%arg0: i32) -> (i32, i32) {
    %c0_i32 = arith.constant 0 : i32
    %c0_i32_0 = arith.constant 0 : i32
    return %arg0, %c0_i32 : i32, i32
  }
  func.func @transform_1(%arg0: i32) -> (i32, i32) {
    %c0_i32 = arith.constant 0 : i32
    %c0_i32_0 = arith.constant 0 : i32
    %c0_i32_1 = arith.constant 0 : i32
    return %c0_i32, %c0_i32_0 : i32, i32
  }
  func.func @transform_2(%arg0: i32) -> (i32, i32) {
    %c0_i32 = arith.constant 0 : i32
    %c0_i32_0 = arith.constant 0 : i32
    %c0_i32_1 = arith.constant 0 : i32
    return %c0_i32, %c0_i32_0 : i32, i32
  }
  func.func @transform_3(%arg0: i32) -> (i32, i32) {
    %c0_i32 = arith.constant 0 : i32
    %c0_i32_0 = arith.constant 0 : i32
    %c0_i32_1 = arith.constant 0 : i32
    return %c0_i32, %c0_i32_0 : i32, i32
  }
  func.func @transform_4(%arg0: i32) -> (i32, i32) {
    %c0_i32 = arith.constant 0 : i32
    %c0_i32_0 = arith.constant 0 : i32
    %c0_i32_1 = arith.constant 0 : i32
    return %c0_i32, %c0_i32_0 : i32, i32
  }
  func.func @transform_5(%arg0: i32) -> (i32, i32) {
    %c0_i32 = arith.constant 0 : i32
    %c0_i32_0 = arith.constant 0 : i32
    return %c0_i32, %arg0 : i32, i32
  }
  func.func @transform_6(%arg0: i32) -> (i32, i32) {
    %c0_i32 = arith.constant 0 : i32
    %c0_i32_0 = arith.constant 0 : i32
    return %c0_i32, %arg0 : i32, i32
  }
}

</mosaic_0001>

<bundles_post_ra>
// kernel: tpu_custom_call.1
= control target key start
LH: loop header
LB: loop body
LE: loop exit
PB: predicated region body
PF: predicated region fallthrough
CT: control target
= control target key end

     0   :  { %12 = vsyncpa [#allocation3], 0  ;;  %vm51_vm0 = vcmask 261120   ;;  %s1019_s0 = inlined_call_operand.vmem [shape: f32[128,32], index: 0, kind: input, shape index: {}]   ;;  %s1020_s1 = inlined_call_operand.vmem [shape: f32[32,128], index: 1, kind: input, shape index: {}]   ;;  %s1021_s2 = inlined_call_operand.vmem [shape: f32[1,128], index: 2, kind: input, shape index: {}]   ;;  %s1022_s3 = inlined_call_operand.vmem [shape: f32[128,128], index: 3, kind: input, shape index: {}]   ;;  %s1023_s4 = inlined_call_operand.vmem [shape: f32[1,128], index: 4, kind: input, shape index: {}]   ;;  %s1024_s5 = inlined_call_operand.hbm [shape: f32[8,128], index: 5, kind: output, shape index: {0}]   ;;  %s1025_s6 = inlined_call_operand.hbm [shape: s32[8,128], index: 6, kind: output, shape index: {1}]  }
   0x1   :  { %v40_v0 = vld [vmem:[%s1020_s1] sm:$0xff]  ;;  %v41_v1 = vld [vmem:[%s1020_s1 + $0x8] sm:$0xff]  ;;  %v42_v2 = vld [vmem:[%s1020_s1 + $0x10] sm:$0xff] }
   0x2   :  { %v704_v3 = vpack.c.bf16 %v41_v1, %v40_v0  ;;  %v43_v4 = vld [vmem:[%s1020_s1 + $0x18] sm:$0xff]  ;;  %v24_v5 = vld [vmem:[%s1019_s0] sm:$0xff]  ;;  %v262_v8 = vld [vmem:[%s1022_s3 + $0x8] sm:$0xff] }
   0x3   :  { %v708_v6 = vpack.c.bf16 %v43_v4, %v42_v2  ;;  %624 = vmatprep.mubr.msk.f32.mxu0 %vm51_vm0, %v24_v5  ;;  %v261_v7 = vld [vmem:[%s1022_s3] sm:$0xff]  ;;  %v263_v9 = vld [vmem:[%s1022_s3 + $0x10] sm:$0xff]  ;;  %v264_v10 = vld [vmem:[%s1022_s3 + $0x18] sm:$0xff] }
   0x4   :  { %705 = vmatprep.subr.bf16.mxu0 %v704_v3  ;;  %v25_v11 = vld [vmem:[%s1019_s0 + $0x8] sm:$0xff]  ;;  %v712_v12 = vpack.c.bf16 %v262_v8, %v261_v7  ;;  %v26_v13 = vld [vmem:[%s1019_s0 + $0x10] sm:$0xff]  ;;  %v716_v14 = vpack.c.bf16 %v264_v10, %v263_v9  ;;  %v265_v15 = vld [vmem:[%s1022_s3 + $0x20] sm:$0xff] }
   0x5   :  { %707 = vmatpush3.bf16.msra.mxu0 %v704_v3  ;;  %v266_v16 = vld [vmem:[%s1022_s3 + $0x28] sm:$0xff] }
   0x6   :  { %709 = vmatprep.subr.bf16.mxu0 %v708_v6  ;;  %744 = vmatprep.subr.bf16.mxu1 %v712_v12 }
   0x7   :  { %752 = vmatpush3.bf16.msra.mxu1 %v712_v12 }
   0x9   :  { %711 = vmatpush3.bf16.msra.mxu0 %v708_v6 }
   0xa   :  { %713 = vmatprep.subr.bf16.mxu0 %v712_v12 }
   0xc   :  { %625 = vmatmul.mubr.msk.f32.vlgmr.msra.gmra.mrb[0].mxu0 %vm51_vm0, %v25_v11 }
   0xd   :  { %13 = vsyncpa [#allocation5], 0  ;;  %627 = vmatprep.mubr.msk.f32.mxu0 %vm51_vm0, %v26_v13  ;;  %v27_v17 = vld [vmem:[%s1019_s0 + $0x18] sm:$0xff]  ;;  %715 = vmatpush3.bf16.msra.mxu0 %v712_v12  ;;  %v28_v18 = vld [vmem:[%s1019_s0 + $0x20] sm:$0xff]  ;;  %v720_v19 = vpack.c.bf16 %v266_v16, %v265_v15 }
   0xe   :  { %717 = vmatprep.subr.bf16.mxu0 %v716_v14  ;;  %745 = vmatprep.subr.bf16.mxu1 %v716_v14  ;;  %v267_v20 = vld [vmem:[%s1022_s3 + $0x30] sm:$0xff]  ;;  %v268_v21 = vld [vmem:[%s1022_s3 + $0x38] sm:$0xff]  ;;  %v29_v22 = vld [vmem:[%s1019_s0 + $0x28] sm:$0xff] }
   0xf   :  { %753 = vmatpush3.bf16.msra.mxu1 %v716_v14  ;;  %v30_v23 = vld [vmem:[%s1019_s0 + $0x30] sm:$0xff]  ;;  %v724_v24 = vpack.c.bf16 %v268_v21, %v267_v20  ;;  %v269_v25 = vld [vmem:[%s1022_s3 + $0x40] sm:$0xff]  ;;  %v270_v26 = vld [vmem:[%s1022_s3 + $0x48] sm:$0xff] }
  0x10   :  { %628 = vmatmul.mubr.msk.f32.gmra.mrb[2].mxu0 %vm51_vm0, %v27_v17  ;;  %746 = vmatprep.subr.bf16.mxu1 %v720_v19  ;;  %v31_v27 = vld [vmem:[%s1019_s0 + $0x38] sm:$0xff]  ;;  %v32_v28 = vld [vmem:[%s1019_s0 + $0x40] sm:$0xff]  ;;  %v728_v29 = vpack.c.bf16 %v270_v26, %v269_v25  ;;  %v271_v30 = vld [vmem:[%s1022_s3 + $0x50] sm:$0xff] }
  0x11   :  { %630 = vmatprep.mubr.msk.f32.mxu0 %vm51_vm0, %v28_v18  ;;  %719 = vmatpush3.bf16.msra.mxu0 %v716_v14  ;;  %v272_v31 = vld [vmem:[%s1022_s3 + $0x58] sm:$0xff]  ;;  %v33_v32 = vld [vmem:[%s1019_s0 + $0x48] sm:$0xff]  ;;  %v34_v33 = vld [vmem:[%s1019_s0 + $0x50] sm:$0xff] }
  0x12   :  { %721 = vmatprep.subr.bf16.mxu0 %v720_v19  ;;  %v732_v34 = vpack.c.bf16 %v272_v31, %v271_v30  ;;  %v273_v35 = vld [vmem:[%s1022_s3 + $0x60] sm:$0xff]  ;;  %v274_v36 = vld [vmem:[%s1022_s3 + $0x68] sm:$0xff]  ;;  %v35_v37 = vld [vmem:[%s1019_s0 + $0x58] sm:$0xff] }
  0x13   :  { %754 = vmatpush3.bf16.msra.mxu1 %v720_v19  ;;  %v36_v38 = vld [vmem:[%s1019_s0 + $0x60] sm:$0xff]  ;;  %v736_v39 = vpack.c.bf16 %v274_v36, %v273_v35  ;;  %v37_v40 = vld [vmem:[%s1019_s0 + $0x68] sm:$0xff]  ;;  %v38_v41 = vld [vmem:[%s1019_s0 + $0x70] sm:$0xff] }
  0x14   :  { %631 = vmatmul.mubr.msk.f32.gmra.mrb[4].mxu0 %vm51_vm0, %v29_v22  ;;  %747 = vmatprep.subr.bf16.mxu1 %v724_v24  ;;  %v39_v42 = vld [vmem:[%s1019_s0 + $0x78] sm:$0xff]  ;;  %v275_v43 = vld [vmem:[%s1022_s3 + $0x70] sm:$0xff]  ;;  %v546_v46 = vld [vmem:[%s1021_s2] ss:$0 sm:$0xff] }
  0x15   :  { %633 = vmatprep.mubr.msk.f32.mxu0 %vm51_vm0, %v30_v23  ;;  %723 = vmatpush3.bf16.msra.mxu0 %v720_v19  ;;  %v276_v44 = vld [vmem:[%s1022_s3 + $0x78] sm:$0xff]  ;;  %v563_v31 = vld [vmem:[%s1023_s4] ss:$0 sm:$0xff]  ;;  %s816_s3 = smov [#allocation4]  }
  0x16   :  { %725 = vmatprep.subr.bf16.mxu0 %v724_v24  ;;  %v740_v45 = vpack.c.bf16 %v276_v44, %v275_v43  ;;  %s534_s4 = sshll.u32 %s816_s3, 4  ;;  %s535_s4 = int_to_ptr.vmem [resolvable:$true] %s534_s4 }
  0x17   :  { %755 = vmatpush3.bf16.msra.mxu1 %v724_v24  ;;  %s768_s20 = scalar_lea.vmem %s535_s4, 128  ;;  %p773_p1 = scmp.lt.s32.totalorder %s535_s4, %s535_s4 }
  0x18   :  { %634 = vmatmul.mubr.msk.f32.gmra.mrb[6].mxu0 %vm51_vm0, %v31_v27  ;;  %748 = vmatprep.subr.bf16.mxu1 %v728_v29  ;;  %p769_p0 = scmp.ne.s32.totalorder %s535_s4, %s768_s20  ;;  %p774_p2 = scmp.lt.s32.totalorder %s768_s20, %s768_s20 }
  0x19   :  { %636 = vmatprep.mubr.msk.f32.mxu0 %vm51_vm0, %v32_v28  ;;  %727 = vmatpush3.bf16.msra.mxu0 %v724_v24 }
  0x1a   :  { %729 = vmatprep.subr.bf16.mxu0 %v728_v29  ;;  %p775_p3 = por %p774_p2, %p773_p1 }
  0x1b   :  { %756 = vmatpush3.bf16.msra.mxu1 %v728_v29 }
  0x1c   :  { %637 = vmatmul.mubr.msk.f32.gmra.mrb[8].mxu0 %vm51_vm0, %v33_v32  ;;  %749 = vmatprep.subr.bf16.mxu1 %v732_v34  ;;  %p776_p4 = pnand %p775_p3, %p769_p0 }
  0x1d   :  { %639 = vmatprep.mubr.msk.f32.mxu0 %vm51_vm0, %v34_v33  ;;  %731 = vmatpush3.bf16.msra.mxu0 %v728_v29 }
  0x1e   :  { %733 = vmatprep.subr.bf16.mxu0 %v732_v34 }
  0x1f   :  { %757 = vmatpush3.bf16.msra.mxu1 %v732_v34 }
  0x20   :  { %640 = vmatmul.mubr.msk.f32.gmra.mrb[10].mxu0 %vm51_vm0, %v35_v37  ;;  %750 = vmatprep.subr.bf16.mxu1 %v736_v39 }
  0x21   :  { %642 = vmatprep.mubr.msk.f32.mxu0 %vm51_vm0, %v36_v38  ;;  %735 = vmatpush3.bf16.msra.mxu0 %v732_v34 }
  0x22   :  { %737 = vmatprep.subr.bf16.mxu0 %v736_v39 }
  0x23   :  { %758 = vmatpush3.bf16.msra.mxu1 %v736_v39 }
  0x24   :  { %643 = vmatmul.mubr.msk.f32.gmra.mrb[12].mxu0 %vm51_vm0, %v37_v40  ;;  %751 = vmatprep.subr.bf16.mxu1 %v740_v45 }
  0x25   :  { %645 = vmatprep.mubr.msk.f32.mxu0 %vm51_vm0, %v38_v41  ;;  %739 = vmatpush3.bf16.msra.mxu0 %v736_v39 }
  0x26   :  { %741 = vmatprep.subr.bf16.mxu0 %v740_v45 }
  0x27   :  { %759 = vmatpush3.bf16.msra.mxu1 %v740_v45 }
  0x28   :  { %646 = vmatmul.mubr.msk.f32.gmra.mrb[14].mxu0 %vm51_vm0, %v39_v42 }
  0x29   :  { %743 = vmatpush3.bf16.msra.mxu0 %v740_v45 }
  0xdf   :  { %v626_v47 = vpop.f32.mrb[0].mxu0 }
  0xe0   :  { %v172_v48 = vadd.f32 %v626_v47, %v546_v46  ;;  %v166_v49 = vpop.f32.mrb[1].mxu0 }
  0xe1   :  { %v167_v50 = vadd.f32 %v546_v46, %v166_v49 }
  0xe2   :  { %v246_v53 = vmax.f32 %v172_v48, 0.0 }
  0xe3   :  { %v245_v51 = vmax.f32 %v167_v50, 0.0  ;;  %v629_v52 = vpop.f32.mrb[2].mxu0 }
  0xe4   :  { %v182_v54 = vadd.f32 %v629_v52, %v546_v46  ;;  %v176_v55 = vpop.f32.mrb[3].mxu0 }
  0xe5   :  { %v177_v56 = vadd.f32 %v546_v46, %v176_v55  ;;  %680 = vmatprep.mubr.f32.mxu0 %v245_v51 }
  0xe6   :  { %v248_v57 = vmax.f32 %v182_v54, 0.0  ;;  %681 = vmatmul.mubr.f32.vlgmr.msra.gmra.mrb[16].mxu0 %v246_v53 }
  0xe7   :  { %v247_v58 = vmax.f32 %v177_v56, 0.0  ;;  %v632_v59 = vpop.f32.mrb[4].mxu0 }
  0xe8   :  { %v192_v60 = vadd.f32 %v632_v59, %v546_v46  ;;  %v186_v61 = vpop.f32.mrb[5].mxu0 }
  0xe9   :  { %683 = vmatprep.mubr.f32.mxu0 %v247_v58  ;;  %v187_v62 = vadd.f32 %v546_v46, %v186_v61 }
  0xea   :  { %684 = vmatmul.mubr.f32.gmra.mrb[18].mxu0 %v248_v57  ;;  %v250_v63 = vmax.f32 %v192_v60, 0.0 }
  0xeb   :  { %v249_v0 = vmax.f32 %v187_v62, 0.0  ;;  %v635_v1 = vpop.f32.mrb[6].mxu0 }
  0xec   :  { %v202_v2 = vadd.f32 %v635_v1, %v546_v46  ;;  %v196_v3 = vpop.f32.mrb[7].mxu0 }
  0xed   :  { %686 = vmatprep.mubr.f32.mxu0 %v249_v0  ;;  %v197_v4 = vadd.f32 %v546_v46, %v196_v3 }
  0xee   :  { %687 = vmatmul.mubr.f32.gmra.mrb[20].mxu0 %v250_v63  ;;  %v252_v5 = vmax.f32 %v202_v2, 0.0 }
  0xef   :  { %v251_v6 = vmax.f32 %v197_v4, 0.0  ;;  %v638_v7 = vpop.f32.mrb[8].mxu0  ;;  %v461_v4 = vlaneseq }
  0xf0   :  { %v212_v8 = vadd.f32 %v638_v7, %v546_v46  ;;  %v206_v9 = vpop.f32.mrb[9].mxu0 }
  0xf1   :  { %689 = vmatprep.mubr.f32.mxu1 %v251_v6  ;;  %v207_v10 = vadd.f32 %v546_v46, %v206_v9  ;;  %v983_v7 = vshrl.u32 %v461_v4, 7 }
  0xf2   :  { %690 = vmatmul.mubr.f32.vlgmr.msra.gmra.mrb[0].mxu1 %v252_v5  ;;  %v254_v11 = vmax.f32 %v212_v8, 0.0 }
  0xf3   :  { %v253_v12 = vmax.f32 %v207_v10, 0.0  ;;  %v641_v13 = vpop.f32.mrb[10].mxu0  ;;  %vm510_vm9 = vcmp.eq.s32.totalorder %v983_v7, 0  ;;  %vm514_vm10 = vcmp.eq.s32.totalorder %v983_v7, 1 }
  0xf4   :  { %v222_v14 = vadd.f32 %v641_v13, %v546_v46  ;;  %v216_v15 = vpop.f32.mrb[11].mxu0 }
  0xf5   :  { %692 = vmatprep.mubr.f32.mxu1 %v253_v12  ;;  %v217_v16 = vadd.f32 %v546_v46, %v216_v15 }
  0xf6   :  { %693 = vmatmul.mubr.f32.gmra.mrb[2].mxu1 %v254_v11  ;;  %v256_v17 = vmax.f32 %v222_v14, 0.0 }
  0xf7   :  { %v255_v18 = vmax.f32 %v217_v16, 0.0  ;;  %v644_v19 = vpop.f32.mrb[12].mxu0 }
  0xf8   :  { %v232_v20 = vadd.f32 %v644_v19, %v546_v46  ;;  %v226_v21 = vpop.f32.mrb[13].mxu0 }
  0xf9   :  { %695 = vmatprep.mubr.f32.mxu1 %v255_v18  ;;  %v227_v22 = vadd.f32 %v546_v46, %v226_v21 }
  0xfa   :  { %696 = vmatmul.mubr.f32.gmra.mrb[4].mxu1 %v256_v17  ;;  %v258_v23 = vmax.f32 %v232_v20, 0.0 }
  0xfb   :  { %v257_v24 = vmax.f32 %v227_v22, 0.0  ;;  %v647_v25 = vpop.f32.mrb[14].mxu0 }
  0xfc   :  { %v242_v26 = vadd.f32 %v647_v25, %v546_v46  ;;  %v236_v27 = vpop.f32.mrb[15].mxu0 }
  0xfd   :  { %698 = vmatprep.mubr.f32.mxu1 %v257_v24  ;;  %v237_v28 = vadd.f32 %v546_v46, %v236_v27 }
  0xfe   :  { %699 = vmatmul.mubr.f32.gmra.mrb[6].mxu1 %v258_v23  ;;  %v260_v29 = vmax.f32 %v242_v26, 0.0 }
  0xff   :  { %v259_v30 = vmax.f32 %v237_v28, 0.0 }
 0x101   :  { %701 = vmatprep.mubr.f32.mxu1 %v259_v30 }
 0x102   :  { %702 = vmatmul.mubr.f32.gmra.mrb[8].mxu1 %v260_v29 }
 0x1b9   :  { %v682_v32 = vpop.f32.mrb[16].mxu0 }
 0x1ba   :  { %v350_v33 = vpop.f32.mrb[17].mxu0  ;;  %v356_v37 = vadd.f32 %v682_v32, %v563_v31 }
 0x1bb   :  { %v351_v34 = vadd.f32 %v563_v31, %v350_v33 }
 0x1bd   :  { %429 = vxpose.xlu0.b32.start [1/16] (narrow) %v351_v34, 8  ;;  %v685_v35 = vpop.f32.mrb[18].mxu0 }
 0x1be   :  { %v360_v36 = vpop.f32.mrb[19].mxu0  ;;  %v366_v43 = vadd.f32 %v685_v35, %v563_v31 }
 0x1bf   :  { %v361_v40 = vadd.f32 %v563_v31, %v360_v36 }
 0x1c1   :  { %430 = vxpose.xlu0.b32.cont [2/16] (narrow) %v356_v37, 8  ;;  %v688_v38 = vpop.f32.mrb[20].mxu0 }
 0x1c2   :  { %v370_v39 = vpop.f32.mrb[21].mxu0  ;;  %v376_v49 = vadd.f32 %v688_v38, %v563_v31 }
 0x1c3   :  { %v371_v46 = vadd.f32 %v563_v31, %v370_v39 }
 0x1c5   :  { %431 = vxpose.xlu0.b32.cont [3/16] (narrow) %v361_v40, 8  ;;  %v691_v41 = vpop.f32.mrb[0].mxu1 }
 0x1c6   :  { %v380_v42 = vpop.f32.mrb[1].mxu1  ;;  %v386_v55 = vadd.f32 %v691_v41, %v563_v31 }
 0x1c7   :  { %v381_v52 = vadd.f32 %v563_v31, %v380_v42 }
 0x1c9   :  { %432 = vxpose.xlu0.b32.cont [4/16] (narrow) %v366_v43, 8  ;;  %v694_v44 = vpop.f32.mrb[2].mxu1 }
 0x1ca   :  { %v390_v45 = vpop.f32.mrb[3].mxu1  ;;  %v396_v57 = vadd.f32 %v694_v44, %v563_v31 }
 0x1cb   :  { %v391_v56 = vadd.f32 %v563_v31, %v390_v45 }
 0x1cd   :  { %433 = vxpose.xlu0.b32.cont [5/16] (narrow) %v371_v46, 8  ;;  %v697_v47 = vpop.f32.mrb[4].mxu1 }
 0x1ce   :  { %v400_v48 = vpop.f32.mrb[5].mxu1  ;;  %v406_v59 = vadd.f32 %v697_v47, %v563_v31 }
 0x1cf   :  { %v401_v58 = vadd.f32 %v563_v31, %v400_v48 }
 0x1d1   :  { %434 = vxpose.xlu0.b32.cont [6/16] (narrow) %v376_v49, 8  ;;  %v700_v50 = vpop.f32.mrb[6].mxu1 }
 0x1d2   :  { %v410_v51 = vpop.f32.mrb[7].mxu1  ;;  %v416_v61 = vadd.f32 %v700_v50, %v563_v31 }
 0x1d3   :  { %v411_v60 = vadd.f32 %v563_v31, %v410_v51 }
 0x1d5   :  { %435 = vxpose.xlu0.b32.cont [7/16] (narrow) %v381_v52, 8  ;;  %v703_v53 = vpop.f32.mrb[8].mxu1 }
 0x1d6   :  { %v420_v54 = vpop.f32.mrb[9].mxu1  ;;  %v426_v63 = vadd.f32 %v703_v53, %v563_v31 }
 0x1d7   :  { %v421_v62 = vadd.f32 %v563_v31, %v420_v54 }
 0x1d9   :  { %436 = vxpose.xlu0.b32.cont [8/16] (narrow) %v386_v55, 8 }
 0x1dd   :  { %437 = vxpose.xlu0.b32.cont [9/16] (narrow) %v391_v56, 8 }
 0x1e1   :  { %438 = vxpose.xlu0.b32.cont [10/16] (narrow) %v396_v57, 8 }
 0x1e5   :  { %439 = vxpose.xlu0.b32.cont [11/16] (narrow) %v401_v58, 8 }
 0x1e9   :  { %440 = vxpose.xlu0.b32.cont [12/16] (narrow) %v406_v59, 8 }
 0x1ed   :  { %441 = vxpose.xlu0.b32.cont [13/16] (narrow) %v411_v60, 8 }
 0x1f1   :  { %442 = vxpose.xlu0.b32.cont [14/16] (narrow) %v416_v61, 8 }
 0x1f5   :  { %443 = vxpose.xlu0.b32.cont [15/16] (narrow) %v421_v62, 8 }
 0x1f9   :  { %444 = vxpose.xlu0.b32.end [16/16] (narrow) %v426_v63, 8 }
 0x23d   :  { %v445_v0 = vpop.trf.xlu0 }
 0x23e   :  { %v463_v1 = vrot.slane %v445_v0, 4 }
 0x240   :  { %v464_v2 = vmax.f32 %v445_v0, %v463_v1 }
 0x242   :  { %v465_v3 = vrot.slane %v464_v2, 2 }
 0x244   :  { %v466_v5 = vmax.f32 %v464_v2, %v465_v3 }
 0x246   :  { %v467_v6 = vrot.slane %v466_v5, 1 }
 0x248   :  { %v468_v8 = vmax.f32 %v466_v5, %v467_v6 }
 0x24a   :  { %vm469_vm1 = vcmp.eq.f32.partialorder %v445_v0, %v468_v8  ;;  %v481_v21 = vsub.f32 %v468_v8, %v468_v8 }
 0x24b   :  { %v470_v9 = vsel %vm469_vm1, %v983_v7, 8 }
 0x24c   :  { %v471_v10 = vrot.slane %v470_v9, 4  ;;  %v482_v24 = vmul.f32 1.442695, %v481_v21 }
 0x24e   :  { %vm472_vm2 = vcmp.lt.s32.totalorder %v470_v9, %v471_v10  ;;  %762 = vpow2.f32 %v482_v24 }
 0x24f   :  { %v473_v11 = vsel %vm472_vm2, %v470_v9, %v471_v10 }
 0x250   :  { %v474_v12 = vrot.slane %v473_v11, 2 }
 0x252   :  { %vm475_vm3 = vcmp.lt.s32.totalorder %v473_v11, %v474_v12 }
 0x253   :  { %v476_v13 = vsel %vm475_vm3, %v473_v11, %v474_v12 }
 0x254   :  { %v477_v14 = vrot.slane %v476_v13, 1 }
 0x256   :  { %vm478_vm4 = vcmp.lt.s32.totalorder %v476_v13, %v477_v14 }
 0x257   :  { %v479_v15 = vsel %vm478_vm4, %v476_v13, %v477_v14 }
 0x258   :  { %vm480_vm5 = vcmp.eq.s32.totalorder %v983_v7, %v479_v15  ;;  %v763_v33 = vpop.eup %762  ;;  %v511_v35 = vsel %vm510_vm9, %v479_v15, 0 }
 0x259   :  { %v484_v16 = vsel %vm480_vm5, -inf, %v445_v0 }
 0x25a   :  { %v485_v17 = vrot.slane %v484_v16, 4 }
 0x25c   :  { %v486_v18 = vmax.f32 %v484_v16, %v485_v17 }
 0x25e   :  { %v487_v19 = vrot.slane %v486_v18, 2 }
 0x260   :  { %v488_v20 = vmax.f32 %v486_v18, %v487_v19 }
 0x262   :  { %v489_v22 = vrot.slane %v488_v20, 1 }
 0x264   :  { %v490_v23 = vmax.f32 %v488_v20, %v489_v22 }
 0x266   :  { %vm491_vm6 = vcmp.eq.f32.partialorder %v484_v16, %v490_v23  ;;  %v503_v25 = vsub.f32 %v490_v23, %v468_v8 }
 0x267   :  { %v492_v26 = vsel %vm491_vm6, %v983_v7, 8 }
 0x268   :  { %v493_v27 = vrot.slane %v492_v26, 4  ;;  %v504_v28 = vmul.f32 1.442695, %v503_v25 }
 0x26a   :  { %vm494_vm7 = vcmp.lt.s32.totalorder %v492_v26, %v493_v27  ;;  %764 = vpow2.f32 %v504_v28 }
 0x26b   :  { %v495_v29 = vsel %vm494_vm7, %v492_v26, %v493_v27 }
 0x26c   :  { %v496_v30 = vrot.slane %v495_v29, 2 }
 0x26e   :  { %vm497_vm8 = vcmp.lt.s32.totalorder %v495_v29, %v496_v30 }
 0x26f   :  { %v498_v31 = vsel %vm497_vm8, %v495_v29, %v496_v30 }
 0x270   :  { %v499_v32 = vrot.slane %v498_v31, 1 }
 0x272   :  { %vm500_vm11 = vcmp.lt.s32.totalorder %v498_v31, %v499_v32 }
 0x273   :  { %v501_v34 = vsel %vm500_vm11, %v498_v31, %v499_v32 }
 0x274   :  { %v765_v36 = vpop.eup %764  ;;  %v515_v37 = vsel %vm514_vm10, %v501_v34, %v511_v35 }
 0x275   :  { %v506_v38 = vadd.f32 %v765_v36, %v763_v33  ;;  %517 = vst [vmem:[#allocation4] sm:$0xff] %v515_v37 }
 0x276   :  { %779 = shalt.err (!%p776_p4)
}
 0x277   :  { %s780_s23 = scalar_lea.hbm %s1025_s6, 128 }
 0x278   :  { %p781_p5 = scmp.ne.s32.totalorder %s1025_s6, %s780_s23  ;;  %p784_p6 = scmp.lt.u32.totalorder %s780_s23, %s1025_s6 }
 0x27a   :  { %p786_p7 = pnand %p784_p6, %p781_p5 }
 0x27c   :  { %789 = shalt.err (!%p786_p7)
}
 0x27d   :  { %537 = dma.vmem_to_hbm [thread:$0]  %s535_s4, 128, %s1025_s6, [#allocation5]   ;;  %766 = vrcp.f32 %v506_v38  ;;  %vm502_vm12 = vcmp.eq.s32.totalorder %v983_v7, %v501_v34 }
 0x27e   :  { %s817_s30 = smov [#allocation2]  }
 0x27f   :  { %s524_s7 = sshll.u32 %s817_s30, 4  ;;  %s525_s7 = int_to_ptr.vmem [resolvable:$true] %s524_s7 }
 0x280   :  { %s790_s8 = scalar_lea.vmem %s525_s7, 128  ;;  %p795_p9 = scmp.lt.s32.totalorder %s525_s7, %s525_s7 }
 0x281   :  { %p791_p8 = scmp.ne.s32.totalorder %s525_s7, %s790_s8  ;;  %p796_p10 = scmp.lt.s32.totalorder %s790_s8, %s790_s8 }
 0x283   :  { %p797_p11 = por %p796_p10, %p795_p9 }
 0x285   :  { %p798_p12 = pnand %p797_p11, %p791_p8 }
 0x287   :  { %v767_v39 = vpop.eup %766 }
 0x288   :  { %v508_v40 = vmul.f32 %v767_v39, %v763_v33  ;;  %v512_v41 = vmul.f32 %v767_v39, %v765_v36 }
 0x28a   :  { %v509_v42 = vsel %vm480_vm5, %v508_v40, 0.0 }
 0x28b   :  { %v513_v43 = vsel %vm502_vm12, %v512_v41, %v509_v42 }
 0x28c   :  { %516 = vst [vmem:[#allocation2] sm:$0xff] %v513_v43 }
 0x28d   :  { %801 = shalt.err (!%p798_p12)
}
 0x28e   :  { %s802_s10 = scalar_lea.hbm %s1024_s5, 128 }
 0x28f   :  { %p803_p13 = scmp.ne.s32.totalorder %s1024_s5, %s802_s10  ;;  %p806_p0 = scmp.lt.u32.totalorder %s802_s10, %s1024_s5 }
 0x291   :  { %p808_p1 = pnand %p806_p0, %p803_p13 }
 0x293   :  { %811 = shalt.err (!%p808_p1)
}
 0x294   :  { %527 = dma.vmem_to_hbm [thread:$0]  %s525_s7, 128, %s1024_s5, [#allocation3]  }
 0x295   :  { %812 = dma.done.wait [#allocation3], 128  }
 0x296   :  { %813 = vsyncadd [#allocation3], 4294967168 }
 0x297   :  { %814 = dma.done.wait [#allocation5], 128  }
 0x298   :  { %815 = vsyncadd [#allocation5], 4294967168 }
 0x299   :  { %544 = vsyncpa [#allocation3], 1 }
 0x29a   :  { %545 = vsyncpa [#allocation5], 1 }

</bundles_post_ra>
